<compile_context>
chip_gen: v5e
topology: v5e:2x2
jax: 0.10.0
libtpu: 0.0.40
codegen_flags: <defaults>
</compile_context>

<pallas_src>
import functools
import math

import jax
import jax.numpy as jnp
from jax import lax
from jax.experimental import pallas as pl
from jax.experimental.pallas import tpu as pltpu


# --------------------------------------------------------------------------- #
# Kernel bodies
# --------------------------------------------------------------------------- #
def _tile_update(a_ref, c_ref, pos, o_ref,
                 m_scr, l_scr, sml_scr, smk_scr, an_scr,
                 *, n_valid, inv_sqrt_t, mm_dtype):
    """Online accumulation for one (anchor-tile i, contrast-tile j) block.

    pos: [tA, tN] f32 positive-pair mask for this block (diagonal NOT yet removed).
    Scratch (persists across the j axis):
      m_scr   [tA,1] running max of raw logits over valid columns
      l_scr   [tA,1] running sum of exp(raw - m) over non-self valid columns
      sml_scr [tA,1] running sum of mask * raw
      smk_scr [tA,1] running sum of mask
      an_scr  [tA,D] normalized / temperature-scaled anchor tile in MXU dtype
    """
    i = pl.program_id(0)
    j = pl.program_id(1)

    @pl.when(j == 0)
    def _():
        m_scr[...] = jnp.full_like(m_scr, -jnp.inf)
        l_scr[...] = jnp.zeros_like(l_scr)
        sml_scr[...] = jnp.zeros_like(sml_scr)
        smk_scr[...] = jnp.zeros_like(smk_scr)
        # Normalize the anchor tile ONCE per A tile and cache it (reused across all
        # N-reduction steps).  F.normalize(dim=-1): x / max(||x||, 1e-12)
        # == x * rsqrt(max(||x||^2, 1e-24)); 1/sqrt(T) folded in.
        a = a_ref[...].astype(jnp.float32)
        a = a * (lax.rsqrt(jnp.maximum(jnp.sum(a * a, axis=1, keepdims=True), 1e-24))
                 * inv_sqrt_t)
        an_scr[...] = a.astype(mm_dtype)

    c = c_ref[...].astype(jnp.float32)
    c = c * (lax.rsqrt(jnp.maximum(jnp.sum(c * c, axis=1, keepdims=True), 1e-24))
             * inv_sqrt_t)

    # NT matmul on the MXU without materializing c.T; f32 accumulation.
    raw = lax.dot_general(an_scr[...], c.astype(mm_dtype),
                          (((1,), (1,)), ((), ())),
                          preferred_element_type=jnp.float32)      # [tA, tN]

    tile_a, tile_n = raw.shape
    g_row = i * tile_a + lax.broadcasted_iota(jnp.int32, (tile_a, tile_n), 0)
    g_col = j * tile_n + lax.broadcasted_iota(jnp.int32, (tile_a, tile_n), 1)
    valid = g_col < n_valid                         # drop N-padding columns
    # Self-contrast removal: anchor row r IS contrast row r (anchors are the first
    # A rows of the contrast matrix, view-major order) — do not change that layout.
    lm = jnp.logical_and(g_row != g_col, valid)
    lm_f = lm.astype(jnp.float32)
    mask_f = pos * lm_f

    tile_max = jnp.max(jnp.where(valid, raw, -jnp.inf), axis=1, keepdims=True)
    m_prev = m_scr[...]
    m_new = jnp.maximum(m_prev, tile_max)
    alpha = jnp.exp(m_prev - m_new)                 # 0 on the first tile (m_prev=-inf)
    p = jnp.exp(raw - m_new) * lm_f
    l_scr[...] = alpha * l_scr[...] + jnp.sum(p, axis=1, keepdims=True)
    m_scr[...] = m_new
    sml_scr[...] = sml_scr[...] + jnp.sum(mask_f * raw, axis=1, keepdims=True)
    smk_scr[...] = smk_scr[...] + jnp.sum(mask_f, axis=1, keepdims=True)

    @pl.when(j == pl.num_programs(1) - 1)
    def _():
        # log_prob = raw - lse (the row-max shift cancels algebraically), hence
        # mean_log_prob_pos = (sum(mask*raw) - sum(mask)*lse) / sum(mask).
        lse = m_scr[...] + jnp.log(l_scr[...])
        denom = smk_scr[...]          # zero -> NaN, same as the torch original
        o_ref[...] = -(sml_scr[...] - denom * lse) / denom


def _supcon_labels_kernel(a_ref, c_ref, alab_ref, clab_ref, o_ref,
                          m_scr, l_scr, sml_scr, smk_scr, an_scr,
                          *, n_valid, inv_sqrt_t, mm_dtype):
    # Positive mask rebuilt in-kernel from per-row labels (no [A,N] mask DMA).
    pos = (alab_ref[...] == clab_ref[...]).astype(jnp.float32)   # [tA,1]==[1,tN]
    _tile_update(a_ref, c_ref, pos, o_ref, m_scr, l_scr, sml_scr, smk_scr, an_scr,
                 n_valid=n_valid, inv_sqrt_t=inv_sqrt_t, mm_dtype=mm_dtype)


def _supcon_mask_kernel(a_ref, c_ref, mask_ref, o_ref,
                        m_scr, l_scr, sml_scr, smk_scr, an_scr,
                        *, n_valid, inv_sqrt_t, mm_dtype):
    # Fallback for an arbitrary user-provided mask (tiled in wrapper, passed as bf16).
    pos = mask_ref[...].astype(jnp.float32)
    _tile_update(a_ref, c_ref, pos, o_ref, m_scr, l_scr, sml_scr, smk_scr, an_scr,
                 n_valid=n_valid, inv_sqrt_t=inv_sqrt_t, mm_dtype=mm_dtype)


# --------------------------------------------------------------------------- #
# Wrapper
# --------------------------------------------------------------------------- #
def _round_up(x, m):
    return ((x + m - 1) // m) * m


def _pick_tile(n, tile):
    # single full-size block when the axis fits, otherwise pad to a tile multiple
    if n <= tile:
        return n, n
    return tile, _round_up(n, tile)


def _pad_rows(x, rows):
    if x.shape[0] == rows:
        return x
    return jnp.pad(x, [(0, rows - x.shape[0])] + [(0, 0)] * (x.ndim - 1))


def supcon_loss(features, intents=None, mask=None, *, temperature=0.1,
                contrast_mode="all", tile_a=256, tile_n=256,
                matmul_dtype=jnp.bfloat16):
    """JAX/Pallas equivalent of SupConLoss.forward (contrast_mode 'all' or 'one').

    tile_a / tile_n must be multiples of 128 when the corresponding axis is tiled
    (256 is a good default for v6e/v7x MXU geometry; use 128 on v5e).
    """
    features = jnp.asarray(features)
    if features.ndim < 3:
        raise ValueError("`features` needs to be [bsz, n_views, ...], "
                         "at least 3 dimensions are required")
    bsz, n_views = features.shape[0], features.shape[1]
    features = features.reshape(bsz, n_views, -1)
    d = features.shape[-1]
    n = bsz * n_views

    if intents is not None and mask is not None:
        raise ValueError("Cannot define both `labels` and `mask`")

    # contrast_feature = torch.cat(torch.unbind(features, dim=1), dim=0):
    # row v*bsz + b == features[b, v]  (view-major).
    contrast = jnp.swapaxes(features, 0, 1).reshape(n, d)

    if contrast_mode == "one":
        anchor_count = 1
    elif contrast_mode == "all":
        anchor_count = n_views
    else:
        raise ValueError(f"Unknown mode: {contrast_mode}")
    a_rows = anchor_count * bsz

    t_a, a_pad = _pick_tile(a_rows, tile_a)
    t_n, n_pad = _pick_tile(n, tile_n)

    if contrast_mode == "all":
        # one HBM copy feeds both matmul operands
        contrast_p = _pad_rows(contrast, max(a_pad, n_pad))
        anchor_p = contrast_p
    else:
        contrast_p = _pad_rows(contrast, n_pad)
        anchor_p = _pad_rows(contrast[:a_rows], a_pad)   # anchors = first bsz rows

    grid = (a_pad // t_a, n_pad // t_n)
    inv_sqrt_t = 1.0 / math.sqrt(float(temperature))

    a_spec = pl.BlockSpec((t_a, d), lambda i, j: (i, 0))
    c_spec = pl.BlockSpec((t_n, d), lambda i, j: (j, 0))
    out_spec = pl.BlockSpec((t_a, 1), lambda i, j: (i, 0))
    scratch = ([pltpu.VMEM((t_a, 1), jnp.float32)] * 4
               + [pltpu.VMEM((t_a, d), matmul_dtype)])   # cached normalized anchors

    if mask is None:
        if intents is None:
            labels = jnp.arange(bsz, dtype=jnp.int32)        # == eye(bsz) mask
        else:
            intents = jnp.asarray(intents).reshape(-1)
            if intents.shape[0] != bsz:
                raise ValueError("Num of labels does not match num of features")
            labels = intents.astype(jnp.int32)
        row_labels = jnp.tile(labels, n_views)               # label of contrast row r
        c_lab = jnp.pad(row_labels, (0, n_pad - n)).reshape(1, n_pad)
        a_lab = jnp.pad(row_labels[:a_rows], (0, a_pad - a_rows)).reshape(a_pad, 1)
        kernel = functools.partial(_supcon_labels_kernel, n_valid=n,
                                   inv_sqrt_t=inv_sqrt_t, mm_dtype=matmul_dtype)
        extra_inputs = (a_lab, c_lab)
        extra_specs = [pl.BlockSpec((t_a, 1), lambda i, j: (i, 0)),
                       pl.BlockSpec((1, t_n), lambda i, j: (0, j))]
    else:
        mask = jnp.asarray(mask, jnp.float32)
        mask_full = jnp.tile(mask, (anchor_count, n_views))  # [A, N]
        mask_full = jnp.pad(
            mask_full, ((0, a_pad - a_rows), (0, n_pad - n))).astype(jnp.bfloat16)
        kernel = functools.partial(_supcon_mask_kernel, n_valid=n,
                                   inv_sqrt_t=inv_sqrt_t, mm_dtype=matmul_dtype)
        extra_inputs = (mask_full,)
        extra_specs = [pl.BlockSpec((t_a, t_n), lambda i, j: (i, j))]

    per_anchor = pl.pallas_call(
        kernel,
        out_shape=jax.ShapeDtypeStruct((a_pad, 1), jnp.float32),
        grid_spec=pltpu.PrefetchScalarGridSpec(
            num_scalar_prefetch=0,
            grid=grid,
            in_specs=[a_spec, c_spec] + extra_specs,
            out_specs=out_spec,
            scratch_shapes=scratch),
        compiler_params=pltpu.CompilerParams(
            dimension_semantics=("parallel", "arbitrary"),
            vmem_limit_bytes=32 * 1024 * 1024),
    )(anchor_p, contrast_p, *extra_inputs)

    # loss = (-mean_log_prob_pos).view(anchor_count, bsz).mean()
    return jnp.mean(per_anchor[:a_rows, 0])


# --------------------------------------------------------------------------- #
# Pure-jnp reference mirroring the torch code
# --------------------------------------------------------------------------- #
def _reference_supcon(features, intents=None, mask=None, *, temperature,
                      contrast_mode="all"):
    bsz, n_views = features.shape[0], features.shape[1]
    f = features.reshape(bsz, n_views, -1)
    f = f / jnp.maximum(jnp.linalg.norm(f, axis=-1, keepdims=True), 1e-12)
    cf = jnp.swapaxes(f, 0, 1).reshape(bsz * n_views, -1)
    if mask is None and intents is None:
        m = jnp.eye(bsz, dtype=jnp.float32)
    elif intents is not None:
        iv = intents.reshape(-1, 1)
        m = (iv == iv.T).astype(jnp.float32)
    else:
        m = mask.astype(jnp.float32)
    if contrast_mode == "one":
        af, anchor_count = f[:, 0], 1
    else:
        af, anchor_count = cf, n_views
    a_rows = anchor_count * bsz
    logits = af @ cf.T / temperature
    logits = logits - jnp.max(logits, axis=1, keepdims=True)
    m = jnp.tile(m, (anchor_count, n_views))
    lm = jnp.ones((a_rows, bsz * n_views), jnp.float32)
    lm = lm.at[jnp.arange(a_rows), jnp.arange(a_rows)].set(0.0)
    m = m * lm
    exp_logits = jnp.exp(logits) * lm
    log_prob = logits - jnp.log(exp_logits.sum(1, keepdims=True))
    mlpp = (m * log_prob).sum(1) / m.sum(1)
    return jnp.mean(-mlpp)


if __name__ == "__main__":
    key = jax.random.PRNGKey(0)
    temperature = 0.1

    # --- case 1: typical small batch, 'all' mode, labels given ---------------
    bsz, n_views, dim = 8, 2, 128
    k1, k2, k3 = jax.random.split(key, 3)
    features = jax.random.normal(k1, (bsz, n_views, dim), dtype=jnp.float32)
    intents = jnp.array([0, 1, 0, 2, 1, 3, 2, 0], dtype=jnp.int32)

    ref_all = _reference_supcon(features, intents, temperature=temperature)

    loss_f32 = supcon_loss(features, intents=intents, temperature=temperature,
                           matmul_dtype=jnp.float32)
    loss_f32 = jax.block_until_ready(loss_f32)
    assert jnp.isfinite(loss_f32)
    assert jnp.allclose(loss_f32, ref_all, rtol=2e-3, atol=2e-3), (loss_f32, ref_all)

    loss_bf16 = supcon_loss(features, intents=intents, temperature=temperature)
    loss_bf16 = jax.block_until_ready(loss_bf16)
    assert jnp.allclose(loss_bf16, ref_all, rtol=5e-2, atol=5e-2), (loss_bf16, ref_all)

    # --- case 2: contrast_mode='one' ------------------------------------------
    ref_one = _reference_supcon(features, intents, temperature=temperature,
                                contrast_mode="one")
    loss_one = supcon_loss(features, intents=intents, temperature=temperature,
                           contrast_mode="one", matmul_dtype=jnp.float32)
    loss_one = jax.block_until_ready(loss_one)
    assert jnp.allclose(loss_one, ref_one, rtol=2e-3, atol=2e-3), (loss_one, ref_one)

    # --- case 3: no labels / no mask (identity mask) ---------------------------
    ref_eye = _reference_supcon(features, temperature=temperature)
    loss_eye = supcon_loss(features, temperature=temperature,
                           matmul_dtype=jnp.float32)
    loss_eye = jax.block_until_ready(loss_eye)
    assert jnp.allclose(loss_eye, ref_eye, rtol=2e-3, atol=2e-3), (loss_eye, ref_eye)

    # --- case 4: explicit user mask (fallback kernel) --------------------------
    user_mask = (intents.reshape(-1, 1) == intents.reshape(1, -1)).astype(jnp.float32)
    loss_mask = supcon_loss(features, mask=user_mask, temperature=temperature,
                            matmul_dtype=jnp.float32)
    loss_mask = jax.block_until_ready(loss_mask)
    assert jnp.allclose(loss_mask, ref_all, rtol=2e-3, atol=2e-3), (loss_mask, ref_all)

    # --- case 5: multi-tile grid with row padding (online-LSE across N tiles) --
    bsz2, n_views2, dim2 = 72, 2, 128
    feats2 = jax.random.normal(k2, (bsz2, n_views2, dim2), dtype=jnp.float32)
    intents2 = jax.random.randint(k3, (bsz2,), 0, 5, dtype=jnp.int32)
    ref2 = _reference_supcon(feats2, intents2, temperature=temperature)
    loss2 = supcon_loss(feats2, intents=intents2, temperature=temperature,
                        tile_a=128, tile_n=128, matmul_dtype=jnp.float32)
    loss2 = jax.block_until_ready(loss2)
    assert jnp.allclose(loss2, ref2, rtol=2e-3, atol=2e-3), (loss2, ref2)

    # TODO(synk): the torch module's total_calls / call_with_repeat_seq counters are
    # host-side Python state and are intentionally not reproduced here.
    print("KERNEL_OK")
</pallas_src>

<mosaic_0001>
module attributes {stable_mosaic.version = 11 : i64} {
  func.func @_supcon_labels_kernel(%arg0: i32, %arg1: i32, %arg2: memref<16x128xf32, #tpu.memory_space<vmem>>, %arg3: memref<16x128xf32, #tpu.memory_space<vmem>>, %arg4: memref<16x1xi32, #tpu.memory_space<vmem>>, %arg5: memref<1x16xi32, #tpu.memory_space<vmem>>, %arg6: memref<16x1xf32, #tpu.memory_space<vmem>>, %arg7: memref<16x1xf32, #tpu.memory_space<vmem>>, %arg8: memref<16x1xf32, #tpu.memory_space<vmem>>, %arg9: memref<16x1xf32, #tpu.memory_space<vmem>>, %arg10: memref<16x1xf32, #tpu.memory_space<vmem>>, %arg11: memref<16x128xf32, #tpu.memory_space<vmem>>) attributes {dimension_semantics = [#tpu.dimension_semantics<parallel>, #tpu.dimension_semantics<arbitrary>], iteration_bounds = array<i64: 1, 1>, scalar_prefetch = 0 : i64, scratch_operands = 5 : i64, tpu.core_type = #tpu.core_type<tc>, window_params = [{transform_indices = @transform_0, window_bounds = array<i64: 16, 128>}, {transform_indices = @transform_1, window_bounds = array<i64: 16, 128>}, {transform_indices = @transform_2, window_bounds = array<i64: 16, 1>}, {transform_indices = @transform_3, window_bounds = array<i64: 1, 16>}, {transform_indices = @transform_4, window_bounds = array<i64: 16, 1>}]} {
    %c0 = arith.constant 0 : index
    %c0_0 = arith.constant 0 : index
    %0 = vector.load %arg4[%c0, %c0_0] : memref<16x1xi32, #tpu.memory_space<vmem>>, vector<16x1xi32>
    %c0_1 = arith.constant 0 : index
    %c0_2 = arith.constant 0 : index
    %1 = vector.load %arg5[%c0_1, %c0_2] : memref<1x16xi32, #tpu.memory_space<vmem>>, vector<1x16xi32>
    %2 = vector.broadcast %0 : vector<16x1xi32> to vector<16x16xi32>
    %3 = vector.broadcast %1 : vector<1x16xi32> to vector<16x16xi32>
    %4 = arith.cmpi eq, %2, %3 : vector<16x16xi32>
    %5 = arith.extui %4 : vector<16x16xi1> to vector<16x16xi32>
    %6 = arith.sitofp %5 : vector<16x16xi32> to vector<16x16xf32>
    %c0_i32 = arith.constant 0 : i32
    %7 = arith.cmpi eq, %arg1, %c0_i32 : i32
    %8 = arith.extui %7 : i1 to i32
    %c0_i32_3 = arith.constant 0 : i32
    %9 = arith.cmpi ne, %8, %c0_i32_3 : i32
    scf.if %9 {
      %cst_36 = arith.constant 0xFF800000 : f32
      %71 = vector.broadcast %cst_36 : f32 to vector<16x1xf32>
      %c0_37 = arith.constant 0 : index
      %c0_38 = arith.constant 0 : index
      %72 = vector.load %arg7[%c0_37, %c0_38] : memref<16x1xf32, #tpu.memory_space<vmem>>, vector<16x1xf32>
      tpu.vector_store %arg7[%c0_37, %c0_38], %71 {strides = array<i32>} : memref<16x1xf32, #tpu.memory_space<vmem>>, vector<16x1xf32>,
      %cst_39 = arith.constant 0.000000e+00 : f32
      %73 = vector.broadcast %cst_39 : f32 to vector<16x1xf32>
      %c0_40 = arith.constant 0 : index
      %c0_41 = arith.constant 0 : index
      %74 = vector.load %arg8[%c0_40, %c0_41] : memref<16x1xf32, #tpu.memory_space<vmem>>, vector<16x1xf32>
      tpu.vector_store %arg8[%c0_40, %c0_41], %73 {strides = array<i32>} : memref<16x1xf32, #tpu.memory_space<vmem>>, vector<16x1xf32>,
      %cst_42 = arith.constant 0.000000e+00 : f32
      %75 = vector.broadcast %cst_42 : f32 to vector<16x1xf32>
      %c0_43 = arith.constant 0 : index
      %c0_44 = arith.constant 0 : index
      %76 = vector.load %arg9[%c0_43, %c0_44] : memref<16x1xf32, #tpu.memory_space<vmem>>, vector<16x1xf32>
      tpu.vector_store %arg9[%c0_43, %c0_44], %75 {strides = array<i32>} : memref<16x1xf32, #tpu.memory_space<vmem>>, vector<16x1xf32>,
      %cst_45 = arith.constant 0.000000e+00 : f32
      %77 = vector.broadcast %cst_45 : f32 to vector<16x1xf32>
      %c0_46 = arith.constant 0 : index
      %c0_47 = arith.constant 0 : index
      %78 = vector.load %arg10[%c0_46, %c0_47] : memref<16x1xf32, #tpu.memory_space<vmem>>, vector<16x1xf32>
      tpu.vector_store %arg10[%c0_46, %c0_47], %77 {strides = array<i32>} : memref<16x1xf32, #tpu.memory_space<vmem>>, vector<16x1xf32>,
      %c0_48 = arith.constant 0 : index
      %c0_49 = arith.constant 0 : index
      %79 = vector.load %arg2[%c0_48, %c0_49] : memref<16x128xf32, #tpu.memory_space<vmem>>, vector<16x128xf32>
      %80 = arith.mulf %79, %79 : vector<16x128xf32>
      %cst_50 = arith.constant dense<0.000000e+00> : vector<16xf32>
      %81 = vector.multi_reduction <add>, %80, %cst_50 [1] : vector<16x128xf32> to vector<16xf32>
      %82 = vector.shape_cast %81 : vector<16xf32> to vector<16x1xf32>
      %cst_51 = arith.constant 1.000000e-24 : f32
      %83 = vector.broadcast %cst_51 : f32 to vector<16x1xf32>
      %84 = arith.maximumf %82, %83 : vector<16x1xf32>
      %85 = math.rsqrt %84 : vector<16x1xf32>
      %cst_52 = arith.constant 3.1622777 : f32
      %86 = vector.broadcast %cst_52 : f32 to vector<16x1xf32>
      %87 = arith.mulf %85, %86 : vector<16x1xf32>
      %88 = vector.broadcast %87 : vector<16x1xf32> to vector<16x128xf32>
      %89 = arith.mulf %79, %88 : vector<16x128xf32>
      %c0_53 = arith.constant 0 : index
      %c0_54 = arith.constant 0 : index
      %90 = vector.load %arg11[%c0_53, %c0_54] : memref<16x128xf32, #tpu.memory_space<vmem>>, vector<16x128xf32>
      tpu.vector_store %arg11[%c0_53, %c0_54], %89 {strides = array<i32>} : memref<16x128xf32, #tpu.memory_space<vmem>>, vector<16x128xf32>,
    } else {
    }
    %c0_4 = arith.constant 0 : index
    %c0_5 = arith.constant 0 : index
    %10 = vector.load %arg3[%c0_4, %c0_5] : memref<16x128xf32, #tpu.memory_space<vmem>>, vector<16x128xf32>
    %11 = arith.mulf %10, %10 : vector<16x128xf32>
    %cst = arith.constant dense<0.000000e+00> : vector<16xf32>
    %12 = vector.multi_reduction <add>, %11, %cst [1] : vector<16x128xf32> to vector<16xf32>
    %13 = vector.shape_cast %12 : vector<16xf32> to vector<16x1xf32>
    %cst_6 = arith.constant 1.000000e-24 : f32
    %14 = vector.broadcast %cst_6 : f32 to vector<16x1xf32>
    %15 = arith.maximumf %13, %14 : vector<16x1xf32>
    %16 = math.rsqrt %15 : vector<16x1xf32>
    %cst_7 = arith.constant 3.1622777 : f32
    %17 = vector.broadcast %cst_7 : f32 to vector<16x1xf32>
    %18 = arith.mulf %16, %17 : vector<16x1xf32>
    %19 = vector.broadcast %18 : vector<16x1xf32> to vector<16x128xf32>
    %20 = arith.mulf %10, %19 : vector<16x128xf32>
    %c0_8 = arith.constant 0 : index
    %c0_9 = arith.constant 0 : index
    %21 = vector.load %arg11[%c0_8, %c0_9] : memref<16x128xf32, #tpu.memory_space<vmem>>, vector<16x128xf32>
    %cst_10 = arith.constant dense<0.000000e+00> : vector<16x16xf32>
    %22 = tpu.matmul %21, %20, %cst_10 {dimension_numbers = #tpu.dot_dimension_numbers<[1], [1], [0], [0], [0, 0, 1, 0], [], []>} : vector<16x128xf32>, vector<16x128xf32>, vector<16x16xf32> -> vector<16x16xf32>
    %c16_i32 = arith.constant 16 : i32
    %23 = arith.muli %arg0, %c16_i32 : i32
    %24 = tpu.iota {dimensions = array<i32: 0>} : vector<16x16xi32>
    %25 = vector.broadcast %23 : i32 to vector<16x16xi32>
    %26 = arith.addi %25, %24 : vector<16x16xi32>
    %c16_i32_11 = arith.constant 16 : i32
    %27 = arith.muli %arg1, %c16_i32_11 : i32
    %28 = tpu.iota {dimensions = array<i32: 1>} : vector<16x16xi32>
    %29 = vector.broadcast %27 : i32 to vector<16x16xi32>
    %30 = arith.addi %29, %28 : vector<16x16xi32>
    %c16_i32_12 = arith.constant 16 : i32
    %31 = vector.broadcast %c16_i32_12 : i32 to vector<16x16xi32>
    %32 = arith.cmpi slt, %30, %31 : vector<16x16xi32>
    %33 = arith.cmpi ne, %26, %30 : vector<16x16xi32>
    %34 = arith.andi %33, %32 : vector<16x16xi1>
    %35 = arith.extui %34 : vector<16x16xi1> to vector<16x16xi32>
    %36 = arith.sitofp %35 : vector<16x16xi32> to vector<16x16xf32>
    %37 = arith.mulf %6, %36 : vector<16x16xf32>
    %cst_13 = arith.constant 0xFF800000 : f32
    %38 = vector.broadcast %cst_13 : f32 to vector<16x16xf32>
    %39 = arith.select %32, %22, %38 : vector<16x16xi1>, vector<16x16xf32>
    %cst_14 = arith.constant dense<0xFF800000> : vector<16xf32>
    %40 = vector.multi_reduction <maximumf>, %39, %cst_14 [1] : vector<16x16xf32> to vector<16xf32>
    %41 = vector.shape_cast %40 : vector<16xf32> to vector<16x1xf32>
    %c0_15 = arith.constant 0 : index
    %c0_16 = arith.constant 0 : index
    %42 = vector.load %arg7[%c0_15, %c0_16] : memref<16x1xf32, #tpu.memory_space<vmem>>, vector<16x1xf32>
    %43 = arith.maximumf %42, %41 : vector<16x1xf32>
    %44 = arith.subf %42, %43 : vector<16x1xf32>
    %45 = math.exp %44 : vector<16x1xf32>
    %46 = vector.broadcast %43 : vector<16x1xf32> to vector<16x16xf32>
    %47 = arith.subf %22, %46 : vector<16x16xf32>
    %48 = math.exp %47 : vector<16x16xf32>
    %49 = arith.mulf %48, %36 : vector<16x16xf32>
    %c0_17 = arith.constant 0 : index
    %c0_18 = arith.constant 0 : index
    %50 = vector.load %arg8[%c0_17, %c0_18] : memref<16x1xf32, #tpu.memory_space<vmem>>, vector<16x1xf32>
    %51 = arith.mulf %45, %50 : vector<16x1xf32>
    %cst_19 = arith.constant dense<0.000000e+00> : vector<16xf32>
    %52 = vector.multi_reduction <add>, %49, %cst_19 [1] : vector<16x16xf32> to vector<16xf32>
    %53 = vector.shape_cast %52 : vector<16xf32> to vector<16x1xf32>
    %54 = arith.addf %51, %53 : vector<16x1xf32>
    %c0_20 = arith.constant 0 : index
    %c0_21 = arith.constant 0 : index
    %55 = vector.load %arg8[%c0_20, %c0_21] : memref<16x1xf32, #tpu.memory_space<vmem>>, vector<16x1xf32>
    tpu.vector_store %arg8[%c0_20, %c0_21], %54 {strides = array<i32>} : memref<16x1xf32, #tpu.memory_space<vmem>>, vector<16x1xf32>,
    %c0_22 = arith.constant 0 : index
    %c0_23 = arith.constant 0 : index
    %56 = vector.load %arg7[%c0_22, %c0_23] : memref<16x1xf32, #tpu.memory_space<vmem>>, vector<16x1xf32>
    tpu.vector_store %arg7[%c0_22, %c0_23], %43 {strides = array<i32>} : memref<16x1xf32, #tpu.memory_space<vmem>>, vector<16x1xf32>,
    %c0_24 = arith.constant 0 : index
    %c0_25 = arith.constant 0 : index
    %57 = vector.load %arg9[%c0_24, %c0_25] : memref<16x1xf32, #tpu.memory_space<vmem>>, vector<16x1xf32>
    %58 = arith.mulf %37, %22 : vector<16x16xf32>
    %cst_26 = arith.constant dense<0.000000e+00> : vector<16xf32>
    %59 = vector.multi_reduction <add>, %58, %cst_26 [1] : vector<16x16xf32> to vector<16xf32>
    %60 = vector.shape_cast %59 : vector<16xf32> to vector<16x1xf32>
    %61 = arith.addf %57, %60 : vector<16x1xf32>
    %c0_27 = arith.constant 0 : index
    %c0_28 = arith.constant 0 : index
    %62 = vector.load %arg9[%c0_27, %c0_28] : memref<16x1xf32, #tpu.memory_space<vmem>>, vector<16x1xf32>
    tpu.vector_store %arg9[%c0_27, %c0_28], %61 {strides = array<i32>} : memref<16x1xf32, #tpu.memory_space<vmem>>, vector<16x1xf32>,
    %c0_29 = arith.constant 0 : index
    %c0_30 = arith.constant 0 : index
    %63 = vector.load %arg10[%c0_29, %c0_30] : memref<16x1xf32, #tpu.memory_space<vmem>>, vector<16x1xf32>
    %cst_31 = arith.constant dense<0.000000e+00> : vector<16xf32>
    %64 = vector.multi_reduction <add>, %37, %cst_31 [1] : vector<16x16xf32> to vector<16xf32>
    %65 = vector.shape_cast %64 : vector<16xf32> to vector<16x1xf32>
    %66 = arith.addf %63, %65 : vector<16x1xf32>
    %c0_32 = arith.constant 0 : index
    %c0_33 = arith.constant 0 : index
    %67 = vector.load %arg10[%c0_32, %c0_33] : memref<16x1xf32, #tpu.memory_space<vmem>>, vector<16x1xf32>
    tpu.vector_store %arg10[%c0_32, %c0_33], %66 {strides = array<i32>} : memref<16x1xf32, #tpu.memory_space<vmem>>, vector<16x1xf32>,
    %c0_i32_34 = arith.constant 0 : i32
    %68 = arith.cmpi eq, %arg1, %c0_i32_34 : i32
    %69 = arith.extui %68 : i1 to i32
    %c0_i32_35 = arith.constant 0 : i32
    %70 = arith.cmpi ne, %69, %c0_i32_35 : i32
    scf.if %70 {
      %c0_36 = arith.constant 0 : index
      %c0_37 = arith.constant 0 : index
      %71 = vector.load %arg7[%c0_36, %c0_37] : memref<16x1xf32, #tpu.memory_space<vmem>>, vector<16x1xf32>
      %c0_38 = arith.constant 0 : index
      %c0_39 = arith.constant 0 : index
      %72 = vector.load %arg8[%c0_38, %c0_39] : memref<16x1xf32, #tpu.memory_space<vmem>>, vector<16x1xf32>
      %73 = math.log %72 : vector<16x1xf32>
      %74 = arith.addf %71, %73 : vector<16x1xf32>
      %c0_40 = arith.constant 0 : index
      %c0_41 = arith.constant 0 : index
      %75 = vector.load %arg10[%c0_40, %c0_41] : memref<16x1xf32, #tpu.memory_space<vmem>>, vector<16x1xf32>
      %c0_42 = arith.constant 0 : index
      %c0_43 = arith.constant 0 : index
      %76 = vector.load %arg9[%c0_42, %c0_43] : memref<16x1xf32, #tpu.memory_space<vmem>>, vector<16x1xf32>
      %77 = arith.mulf %75, %74 : vector<16x1xf32>
      %78 = arith.subf %76, %77 : vector<16x1xf32>
      %cst_44 = arith.constant 0.000000e+00 : f32
      %79 = vector.broadcast %cst_44 : f32 to vector<16x1xf32>
      %80 = arith.subf %79, %78 : vector<16x1xf32>
      %81 = arith.divf %80, %75 : vector<16x1xf32>
      %c0_45 = arith.constant 0 : index
      %c0_46 = arith.constant 0 : index
      %82 = vector.load %arg6[%c0_45, %c0_46] : memref<16x1xf32, #tpu.memory_space<vmem>>, vector<16x1xf32>
      tpu.vector_store %arg6[%c0_45, %c0_46], %81 {strides = array<i32>} : memref<16x1xf32, #tpu.memory_space<vmem>>, vector<16x1xf32>,
    } else {
    }
    return
  }
  func.func @transform_0(%arg0: i32, %arg1: i32) -> (i32, i32) {
    %c0_i32 = arith.constant 0 : i32
    %c0_i32_0 = arith.constant 0 : i32
    return %arg0, %c0_i32 : i32, i32
  }
  func.func @transform_1(%arg0: i32, %arg1: i32) -> (i32, i32) {
    %c0_i32 = arith.constant 0 : i32
    %c0_i32_0 = arith.constant 0 : i32
    return %arg1, %c0_i32 : i32, i32
  }
  func.func @transform_2(%arg0: i32, %arg1: i32) -> (i32, i32) {
    %c0_i32 = arith.constant 0 : i32
    %c0_i32_0 = arith.constant 0 : i32
    return %arg0, %c0_i32 : i32, i32
  }
  func.func @transform_3(%arg0: i32, %arg1: i32) -> (i32, i32) {
    %c0_i32 = arith.constant 0 : i32
    %c0_i32_0 = arith.constant 0 : i32
    return %c0_i32, %arg1 : i32, i32
  }
  func.func @transform_4(%arg0: i32, %arg1: i32) -> (i32, i32) {
    %c0_i32 = arith.constant 0 : i32
    %c0_i32_0 = arith.constant 0 : i32
    return %arg0, %c0_i32 : i32, i32
  }
}

</mosaic_0001>

<bundles_post_ra>
// kernel: tpu_custom_call.1
= control target key start
LH: loop header
LB: loop body
LE: loop exit
PB: predicated region body
PF: predicated region fallthrough
CT: control target
= control target key end

     0   :  { %9 = vsyncpa [#allocation8], 0  ;;  %s386_s18 = smov [#allocation7]   ;;  %s387_s20 = smov 128   ;;  %s512_s0 = inlined_call_operand.vmem [shape: f32[16,128], index: 0, kind: input, shape index: {}]   ;;  %s513_s1 = inlined_call_operand.hbm [shape: f32[16,128], index: 1, kind: input, shape index: {}]   ;;  %s514_s2 = inlined_call_operand.vmem [shape: s32[16,1], index: 2, kind: input, shape index: {}]   ;;  %s515_s3 = inlined_call_operand.vmem [shape: s32[1,16], index: 3, kind: input, shape index: {}]   ;;  %s516_s4 = inlined_call_operand.vmem [shape: f32[16,1], index: 4, kind: output, shape index: {}]  }
   0x1   :  { %s16_s17 = sshll.u32 %s513_s1, 4  ;;  %s18_s19 = sshll.u32 %s386_s18, 4  ;;  %s17_s17 = int_to_ptr.hbm [resolvable:$true] %s16_s17  ;;  %s19_s19 = int_to_ptr.vmem [resolvable:$true] %s18_s19 }
   0x2   :  { %s388_s21 = smov 8  }
   0x3   :  { %24 = dma.hbm_to_vmem [thread:$0]  %s17_s17, 256, %s19_s19, [#allocation8], %s387_s20, %s387_s20, %s388_s21  }
   0x4   :  { %384 = dma.done.wait [#allocation8], 256  }
   0x5   :  { %385 = vsyncadd [#allocation8], 4294967040  ;;  %v99_v0 = vld [vmem:[#allocation7 + $0x8] sm:$0xff]  ;;  %v423_v1 = vld [vmem:[%s512_s0] sm:$0xff]  ;;  %v389_v52 = vmov 0   ;;  %v158_v53 = vlaneseq  ;;  %vm182_vm13 = vcmask 130048  }
   0x6   :  { %v101_v2 = vmul.f32 %v99_v0, %v99_v0  ;;  %v64_v3 = vmul.f32 %v423_v1, %v423_v1  ;;  %v427_v4 = vld [vmem:[#allocation7] sm:$0xff]  ;;  %v432_v5 = vld [vmem:[%s512_s0 + $0x8] sm:$0xff]  ;;  %334 = vset.pattern.permute.xlu2 %v389_v52  ;;  %332 = vset.pattern.permute.xlu0 %v389_v52  ;;  %vm53_vm14 = vcmask 7168   ;;  %v390_v61 = vmov -inf  }
   0x7   :  { %v100_v6 = vmul.f32 %v427_v4, %v427_v4  ;;  %v65_v7 = vmul.f32 %v432_v5, %v432_v5  ;;  %333 = vset.pattern.permute.xlu1 %v389_v52  ;;  %v442_v54 = vand.u32 127, %v158_v53  ;;  %54 = vst.msk [vmem:[#allocation2] sm:$0xff] %vm53_vm14, %v390_v61  ;;  %v33_v62 = vld [vmem:[%s514_s2] sm:$0xff]  ;;  %v34_v63 = vld [vmem:[%s514_s2 + $0x8] sm:$0xff] }
   0x8   :  { %104 = vadd.xlane.f32.xlu0 %v101_v2  ;;  %66 = vadd.xlane.f32.xlu1 %v64_v3  ;;  %55 = vst.msk [vmem:[#allocation2 + $0x8] sm:$0xff] %vm53_vm14, %v390_v61 }
   0x9   :  { %vm169_vm12 = vcmp.lt.s32.totalorder %v442_v54, 16 }
  0x10   :  { %102 = vadd.xlane.f32.xlu0 %v100_v6  ;;  %68 = vadd.xlane.f32.xlu1 %v65_v7 }
  0x7b   :  { %v105_v8 = vpop.xlane.xlu0 %104  ;;  %v67_v9 = vpop.xlane.xlu1 %66 }
  0x7c   :  { %v107_v10 = vmax.f32 %v105_v8, 1e-24  ;;  %v70_v11 = vmax.f32 %v67_v9, 1e-24  ;;  %v159_v9 = vshrl.u32 %v158_v53, 7 }
  0x7e   :  { %336 = vrsqrt.f32 %v107_v10  ;;  %vm124_vm1 = vweird.f32 %v107_v10  ;;  %vm78_vm3 = vweird.f32 %v70_v11  ;;  %vm170_vm15 = vcmp.ne.s32.totalorder %v159_v9, %v442_v54 }
  0x7f   :  { %338 = vrsqrt.f32 %v70_v11 }
  0x83   :  { %v103_v12 = vpop.xlane.xlu0 %102  ;;  %v69_v13 = vpop.xlane.xlu1 %68 }
  0x84   :  { %v337_v14 = vpop.eup %336  ;;  %v106_v15 = vmax.f32 %v103_v12, 1e-24  ;;  %v71_v16 = vmax.f32 %v69_v13, 1e-24 }
  0x85   :  { %v339_v17 = vpop.eup %338  ;;  %v119_v18 = vmul.f32 %v337_v14, %v107_v10  ;;  %vm125_vm0 = vweird.f32 %v337_v14  ;;  %v335_v10 = vld [vmem:[%s515_s3] ss:$0 sm:$0xff] }
  0x86   :  { %v73_v19 = vmul.f32 %v339_v17, %v70_v11  ;;  %340 = vrsqrt.f32 %v106_v15  ;;  %vm126_vm2 = vmor %vm124_vm1, %vm125_vm0  ;;  %vm79_vm4 = vweird.f32 %v339_v17  ;;  %vm88_vm6 = vweird.f32 %v71_v16 }
  0x87   :  { %v120_v20 = vmul.f32 %v337_v14, %v119_v18  ;;  %342 = vrsqrt.f32 %v71_v16  ;;  %vm114_vm8 = vweird.f32 %v106_v15  ;;  %vm80_vm9 = vmor %vm78_vm3, %vm79_vm4 }
  0x88   :  { %v74_v21 = vmul.f32 %v339_v17, %v73_v19  ;;  %vm172_vm1 = vmand %vm170_vm15, %vm169_vm12  ;;  %v160_v19 = vadd.s32 8, %v159_v9 }
  0x89   :  { %v121_v22 = vmul.f32 0.5, %v120_v20 }
  0x8a   :  { %v75_v23 = vmul.f32 0.5, %v74_v21 }
  0x8b   :  { %v122_v24 = vsub.f32 1.5, %v121_v22 }
  0x8c   :  { %v341_v25 = vpop.eup %340  ;;  %v76_v29 = vsub.f32 1.5, %v75_v23 }
  0x8d   :  { %v343_v26 = vpop.eup %342  ;;  %v109_v27 = vmul.f32 %v341_v25, %v106_v15  ;;  %v123_v28 = vmul.f32 %v337_v14, %v122_v24  ;;  %vm115_vm5 = vweird.f32 %v341_v25 }
  0x8e   :  { %v83_v30 = vmul.f32 %v343_v26, %v71_v16  ;;  %v77_v38 = vmul.f32 %v339_v17, %v76_v29  ;;  %vm89_vm7 = vweird.f32 %v343_v26  ;;  %vm116_vm10 = vmor %vm114_vm8, %vm115_vm5 }
  0x8f   :  { %v110_v31 = vmul.f32 %v341_v25, %v109_v27  ;;  %v127_v32 = vsel %vm126_vm2, %v337_v14, %v123_v28  ;;  %vm90_vm11 = vmor %vm88_vm6, %vm89_vm7  ;;  %vm171_vm2 = vcmp.ne.s32.totalorder %v160_v19, %v442_v54 }
  0x90   :  { %v84_v33 = vmul.f32 %v343_v26, %v83_v30  ;;  %v129_v34 = vmul.f32 3.1622777, %v127_v32  ;;  %v81_v42 = vsel %vm80_vm9, %v339_v17, %v77_v38  ;;  %vm173_vm4 = vmand %vm171_vm2, %vm169_vm12 }
  0x91   :  { %v111_v35 = vmul.f32 0.5, %v110_v31  ;;  %v92_v47 = vmul.f32 3.1622777, %v81_v42 }
  0x92   :  { %v85_v36 = vmul.f32 0.5, %v84_v33  ;;  %v131_v37 = vmul.f32 %v129_v34, %v99_v0  ;;  %v391_v0 = vmov 0.0  }
  0x93   :  { %v112_v39 = vsub.f32 1.5, %v111_v35  ;;  %v94_v50 = vmul.f32 %v92_v47, %v423_v1  ;;  %56 = vst.msk [vmem:[#allocation3] sm:$0xff] %vm53_vm14, %v391_v0  ;;  %v189_v1 = vld [vmem:[#allocation2] sm:$0xff]  ;;  %v322_v13 = vsel %vm172_vm1, 1.0, %v391_v0  ;;  %v323_v28 = vsel %vm173_vm4, 1.0, %v391_v0 }
  0x94   :  { %v86_v40 = vsub.f32 1.5, %v85_v36  ;;  %148 = vmatpush.xpose.msra.mxu0 %v131_v37  ;;  %324 = vmatpush.xpose.msra.mxu1 %v131_v37  ;;  %57 = vst.msk [vmem:[#allocation3 + $0x8] sm:$0xff] %vm53_vm14, %v391_v0 }
  0x95   :  { %v113_v41 = vmul.f32 %v341_v25, %v112_v39  ;;  %58 = vst.msk [vmem:[#allocation4] sm:$0xff] %vm53_vm14, %v391_v0 }
  0x96   :  { %v87_v43 = vmul.f32 %v343_v26, %v86_v40  ;;  %59 = vst.msk [vmem:[#allocation4 + $0x8] sm:$0xff] %vm53_vm14, %v391_v0 }
  0x97   :  { %v117_v44 = vsel %vm116_vm10, %v341_v25, %v113_v41  ;;  %60 = vst.msk [vmem:[#allocation5] sm:$0xff] %vm53_vm14, %v391_v0 }
  0x98   :  { %v128_v45 = vmul.f32 3.1622777, %v117_v44  ;;  %v91_v46 = vsel %vm90_vm11, %v343_v26, %v87_v43  ;;  %61 = vst.msk [vmem:[#allocation5 + $0x8] sm:$0xff] %vm53_vm14, %v391_v0 }
  0x99   :  { %v93_v48 = vmul.f32 3.1622777, %v91_v46 }
  0x9a   :  { %v130_v49 = vmul.f32 %v128_v45, %v427_v4  ;;  %v217_v44 = vld [vmem:[#allocation3] sm:$0xff] }
  0x9b   :  { %v95_v51 = vmul.f32 %v93_v48, %v432_v5  ;;  %v190_v5 = vld [vmem:[#allocation2 + $0x8] sm:$0xff] }
  0x9c   :  { %149 = vmatpush.xpose.msra.mxu0 %v130_v49  ;;  %325 = vmatpush.xpose.msra.mxu1 %v130_v49  ;;  %v234_v61 = vld [vmem:[#allocation4] sm:$0xff] }
  0x9e   :  { %v248_v38 = vld [vmem:[#allocation5] sm:$0xff] }
  0x9f   :  { %150 = vmatmul.f32.vlgmr.msra.gmra.mxu0 %v94_v50  ;;  %153 = vmatmul.f32.vlgmr.msra.gmra.mxu1 %v95_v51  ;;  %v218_v50 = vld [vmem:[#allocation3 + $0x8] sm:$0xff] }
  0xa0   :  { %v249_v51 = vld [vmem:[#allocation5 + $0x8] sm:$0xff] }
 0x11c   :  { %v445_v55 = vpop.f32.mrf.mxu0  ;;  %v451_v58 = vpop.f32.mrf.mxu1 }
 0x11d   :  { %v180_v56 = vsel %vm169_vm12, %v445_v55, -inf  ;;  %v181_v59 = vsel %vm169_vm12, %v451_v58, -inf }
 0x11e   :  { %v183_v57 = vsel %vm182_vm13, %v180_v56, -inf  ;;  %v186_v60 = vsel %vm182_vm13, %v181_v59, -inf }
 0x11f   :  { %184 = vmax.xlane.f32.xlu2 %v183_v57 }
 0x127   :  { %187 = vmax.xlane.f32.xlu2 %v186_v60  ;;  %v235_v60 = vld [vmem:[#allocation4 + $0x8] sm:$0xff] }
 0x13f   :  { %37 = vperm.xlu2 %334, %v33_v62  }
 0x147   :  { %40 = vperm.xlu2 %334, %v34_v63  }
 0x192   :  { %v185_v2 = vpop.xlane.xlu2 %184 }
 0x193   :  { %v191_v3 = vmax.f32 %v189_v1, %v185_v2 }
 0x195   :  { %v193_v4 = vsub.f32 %v189_v1, %v191_v3  ;;  %232 = vst.msk [vmem:[#allocation2] sm:$0xff] %vm53_vm14, %v191_v3  ;;  %201 = vperm.xlu0 %332, %v191_v3  }
 0x197   :  { %v195_v41 = vmul.f32 1.442695, %v193_v4 }
 0x19a   :  { %v188_v6 = vpop.xlane.xlu2 %187 }
 0x19b   :  { %v192_v7 = vmax.f32 %v190_v5, %v188_v6 }
 0x19d   :  { %v194_v8 = vsub.f32 %v190_v5, %v192_v7  ;;  %233 = vst.msk [vmem:[#allocation2 + $0x8] sm:$0xff] %vm53_vm14, %v192_v7  ;;  %206 = vperm.xlu1 %333, %v192_v7  }
 0x19f   :  { %v197_v42 = vmul.f32 1.442695, %v194_v8  ;;  %v263_v8 = vld [vmem:[#allocation2] sm:$0xff] }
 0x1a2   :  { %v38_v11 = vpop.permute.xlu2 %37 }
 0x1a3   :  { %vm43_vm0 = vcmp.eq.s32.totalorder %v38_v11, %v335_v10 }
 0x1a4   :  { %v320_v12 = vsel %vm43_vm0, 1.0, %v391_v0 }
 0x1a5   :  { %v178_v14 = vmul.f32 %v322_v13, %v320_v12 }
 0x1a7   :  { %v250_v15 = vsel %vm182_vm13, %v178_v14, 0.0  ;;  %v236_v34 = vmul.f32 %v178_v14, %v445_v55 }
 0x1a9   :  { %v238_v36 = vsel %vm182_vm13, %v236_v34, 0.0 }
 0x1aa   :  { %v41_v23 = vpop.permute.xlu2 %40 }
 0x1ab   :  { %vm44_vm3 = vcmp.eq.s32.totalorder %v41_v23, %v335_v10 }
 0x1ac   :  { %v321_v27 = vsel %vm44_vm3, 1.0, %v391_v0 }
 0x1ad   :  { %v179_v31 = vmul.f32 %v323_v28, %v321_v27 }
 0x1af   :  { %v253_v33 = vsel %vm182_vm13, %v179_v31, 0.0  ;;  %v237_v35 = vmul.f32 %v179_v31, %v451_v58 }
 0x1b1   :  { %v241_v37 = vsel %vm182_vm13, %v237_v35, 0.0 }
 0x1bf   :  { %251 = vadd.xlane.f32.xlu0 %v250_v15 }
 0x207   :  { %v202_v16 = vpop.permute.xlu0 %201 }
 0x208   :  { %v209_v17 = vsub.f32 %v445_v55, %v202_v16 }
 0x20a   :  { %v211_v18 = vmul.f32 1.442695, %v209_v17 }
 0x20c   :  { %344 = vpow2.f32 %v211_v18 }
 0x20f   :  { %v207_v20 = vpop.permute.xlu1 %206 }
 0x210   :  { %v210_v21 = vsub.f32 %v451_v58, %v207_v20 }
 0x212   :  { %v345_v22 = vpop.eup %344  ;;  %v213_v24 = vmul.f32 1.442695, %v210_v21  ;;  %v264_v21 = vld [vmem:[#allocation2 + $0x8] sm:$0xff] }
 0x213   :  { %v215_v25 = vmul.f32 %v345_v22, %v322_v13 }
 0x214   :  { %346 = vpow2.f32 %v213_v24 }
 0x215   :  { %v221_v26 = vsel %vm182_vm13, %v215_v25, 0.0  ;;  %348 = vpow2.f32 %v195_v41 }
 0x216   :  { %222 = vadd.xlane.f32.xlu1 %v221_v26  ;;  %350 = vpow2.f32 %v197_v42 }
 0x21a   :  { %v347_v29 = vpop.eup %346 }
 0x21b   :  { %v216_v30 = vmul.f32 %v347_v29, %v323_v28  ;;  %v349_v43 = vpop.eup %348 }
 0x21c   :  { %v219_v45 = vmul.f32 %v349_v43, %v217_v44  ;;  %v351_v49 = vpop.eup %350 }
 0x21d   :  { %v224_v32 = vsel %vm182_vm13, %v216_v30, 0.0  ;;  %v220_v52 = vmul.f32 %v351_v49, %v218_v50 }
 0x21e   :  { %225 = vadd.xlane.f32.xlu2 %v224_v32  ;;  %254 = vadd.xlane.f32.xlu1 %v253_v33 }
 0x226   :  { %239 = vadd.xlane.f32.xlu2 %v238_v36  ;;  %242 = vadd.xlane.f32.xlu1 %v241_v37 }
 0x232   :  { %v252_v39 = vpop.xlane.xlu0 %251 }
 0x233   :  { %v256_v40 = vadd.f32 %v252_v39, %v248_v38 }
 0x235   :  { %258 = vst.msk [vmem:[#allocation5] sm:$0xff] %vm53_vm14, %v256_v40 }
 0x23c   :  { %v273_v46 = vld [vmem:[#allocation5] sm:$0xff] }
 0x23d   :  { %352 = vrcp.f32 %v273_v46  ;;  %vm288_vm5 = vweird.f32 %v273_v46  ;;  %v294_v10 = vand.u32 2147483648, %v273_v46  ;;  %v292_v12 = vand.u32 2147483647, %v273_v46 }
 0x23f   :  { %v295_v19 = vor.u32 1.1754944e-38, %v294_v10  ;;  %vm293_vm8 = vcmp.eq.f32.partialorder %v292_v12, 8.507059e+37 }
 0x243   :  { %v353_v55 = vpop.eup %352 }
 0x244   :  { %v284_v59 = vmul.f32 %v353_v55, %v273_v46  ;;  %vm289_vm6 = vweird.f32 %v353_v55 }
 0x245   :  { %vm498_vm7 = vmor %vm288_vm5, %vm289_vm6 }
 0x246   :  { %v285_v62 = vsub.f32 1.0, %v284_v59 }
 0x248   :  { %v286_v7 = vmul.f32 %v353_v55, %v285_v62 }
 0x24a   :  { %v287_v11 = vadd.f32 %v353_v55, %v286_v7 }
 0x24c   :  { %v291_v23 = vsel %vm498_vm7, %v353_v55, %v287_v11 }
 0x24d   :  { %v296_v31 = vsel %vm293_vm8, %v295_v19, %v291_v23 }
 0x289   :  { %v223_v47 = vpop.xlane.xlu1 %222 }
 0x28a   :  { %v227_v48 = vadd.f32 %v223_v47, %v219_v45 }
 0x28c   :  { %230 = vst.msk [vmem:[#allocation3] sm:$0xff] %vm53_vm14, %v227_v48 }
 0x291   :  { %v255_v53 = vpop.xlane.xlu1 %254  ;;  %v226_v54 = vpop.xlane.xlu2 %225 }
 0x292   :  { %v257_v56 = vadd.f32 %v255_v53, %v249_v51  ;;  %v228_v57 = vadd.f32 %v226_v54, %v220_v52 }
 0x293   :  { %v265_v58 = vld [vmem:[#allocation3] sm:$0xff] }
 0x294   :  { %354 = vlog2.f32 %v265_v58  ;;  %259 = vst.msk [vmem:[#allocation5 + $0x8] sm:$0xff] %vm53_vm14, %v257_v56 }
 0x295   :  { %231 = vst.msk [vmem:[#allocation3 + $0x8] sm:$0xff] %vm53_vm14, %v228_v57 }
 0x299   :  { %v243_v63 = vpop.xlane.xlu1 %242  ;;  %v240_v0 = vpop.xlane.xlu2 %239 }
 0x29a   :  { %v355_v1 = vpop.eup %354  ;;  %v245_v2 = vadd.f32 %v243_v63, %v235_v60  ;;  %v244_v3 = vadd.f32 %v240_v0, %v234_v61 }
 0x29b   :  { %v268_v4 = vmul.f32 0.6931472, %v355_v1  ;;  %v274_v5 = vld [vmem:[#allocation5 + $0x8] sm:$0xff] }
 0x29c   :  { %356 = vrcp.f32 %v274_v5  ;;  %v266_v6 = vld [vmem:[#allocation3 + $0x8] sm:$0xff]  ;;  %247 = vst.msk [vmem:[#allocation4 + $0x8] sm:$0xff] %vm53_vm14, %v245_v2  ;;  %v309_v25 = vand.u32 2147483648, %v274_v5  ;;  %v307_v28 = vand.u32 2147483647, %v274_v5  ;;  %vm303_vm10 = vweird.f32 %v274_v5 }
 0x29d   :  { %358 = vlog2.f32 %v266_v6  ;;  %246 = vst.msk [vmem:[#allocation4] sm:$0xff] %vm53_vm14, %v244_v3  ;;  %v271_v9 = vadd.f32 %v268_v4, %v263_v8 }
 0x29e   :  { %v310_v35 = vor.u32 1.1754944e-38, %v309_v25  ;;  %vm308_vm12 = vcmp.eq.f32.partialorder %v307_v28, 8.507059e+37 }
 0x29f   :  { %v277_v17 = vmul.f32 %v273_v46, %v271_v9 }
 0x2a2   :  { %v357_v13 = vpop.eup %356 }
 0x2a3   :  { %v359_v15 = vpop.eup %358  ;;  %v299_v16 = vmul.f32 %v357_v13, %v274_v5  ;;  %vm304_vm9 = vweird.f32 %v357_v13  ;;  %v276_v33 = vld [vmem:[#allocation4 + $0x8] sm:$0xff] }
 0x2a4   :  { %v270_v18 = vmul.f32 0.6931472, %v359_v15  ;;  %v275_v20 = vld [vmem:[#allocation4] sm:$0xff]  ;;  %vm305_vm11 = vmor %vm303_vm10, %vm304_vm9 }
 0x2a5   :  { %v300_v22 = vsub.f32 1.0, %v299_v16  ;;  %v279_v24 = vsub.f32 %v275_v20, %v277_v17 }
 0x2a6   :  { %v272_v26 = vadd.f32 %v270_v18, %v264_v21 }
 0x2a7   :  { %v301_v27 = vmul.f32 %v357_v13, %v300_v22  ;;  %v281_v29 = vsub.f32 0.0, %v279_v24 }
 0x2a8   :  { %v278_v30 = vmul.f32 %v274_v5, %v272_v26 }
 0x2a9   :  { %v302_v32 = vadd.f32 %v357_v13, %v301_v27  ;;  %v297_v34 = vmul.f32 %v296_v31, %v281_v29 }
 0x2aa   :  { %v280_v36 = vsub.f32 %v276_v33, %v278_v30 }
 0x2ab   :  { %v306_v37 = vsel %vm305_vm11, %v357_v13, %v302_v32  ;;  %313 = vst.msk [vmem:[%s516_s4] sm:$0xff] %vm53_vm14, %v297_v34 }
 0x2ac   :  { %v311_v38 = vsel %vm308_vm12, %v310_v35, %v306_v37  ;;  %v282_v39 = vsub.f32 0.0, %v280_v36 }
 0x2ae   :  { %v312_v40 = vmul.f32 %v311_v38, %v282_v39 }
 0x2b0   :  { %314 = vst.msk [vmem:[%s516_s4 + $0x8] sm:$0xff] %vm53_vm14, %v312_v40 }
 0x2b1   :  { %319 = vsyncpa [#allocation8], 1 }

</bundles_post_ra>
